<compile_context>
chip_gen: v6e
topology: v6e:2x2x1
jax: 0.10.0
libtpu: 0.0.40
codegen_flags: <defaults>
</compile_context>

<pallas_src>
import functools

import jax
import jax.numpy as jnp
from jax import lax
from jax.experimental import pallas as pl
from jax.experimental.pallas import tpu as pltpu

# ---------------- configuration (the "node" / gptq_config) -------------------
N_BITS = 4            # weight quantizer bit-width
IN_CH = 4
OUT_CH = 8
KH = KW = 3
STRIDE = 1
PAD = 1               # 'same' padding for 3x3 stride-1


# --------------- fused kernel: fake-quant + im2col-conv matmul ----------------
def _fused_conv_fq_kernel(w_ref, inv_delta_ref, delta_ref, bias_ref, x_ref, out_ref,
                          *, c, kh, kw, wp, qf, n_bits):
    """One batch element per grid step.

    w_ref:         [O, kh*kw*c] f32  float weight, tap-major (kh, kw, c) order
    inv_delta_ref: [O, 1]       f32  2^(n_bits-1) / threshold (exact: thr is pow2)
    delta_ref:     [O, 1]       f32  threshold / 2^(n_bits-1)
    bias_ref:      [O, 1]       f32
    x_ref:         [1, c, FLAT] f32  zero-padded input, H*W flattened (+kw-1 tail)
    out_ref:       [1, O, qf]   f32  qf = OH*WP; padded columns sliced off outside
    """
    qmin = -(2.0 ** (n_bits - 1))
    qmax = 2.0 ** (n_bits - 1) - 1.0

    # GPTQ symmetric per-output-channel fake quantization (STE forward).
    # Recomputed per grid step: ~1 vreg of VPU work, hides under the x DMA.
    w_q = jnp.clip(jnp.round(w_ref[...] * inv_delta_ref[...]), qmin, qmax) * delta_ref[...]

    x_flat = x_ref[0]                                   # (c, FLAT)
    o = w_ref.shape[0]

    # Fused im2col: each kernel tap (i, j) is a static lane shift of the flat
    # input; accumulate 9 small [O,c]@[c,qf] matmuls on the MXU.
    acc = jnp.zeros((o, qf), jnp.float32)
    for t in range(kh * kw):
        i, j = divmod(t, kw)
        shift = i * wp + j
        x_t = x_flat[:, shift:shift + qf]               # (c, qf)  shifted flat view
        w_t = w_q[:, t * c:(t + 1) * c]                 # (o, c)   tap weights
        acc = acc + jnp.dot(w_t, x_t, preferred_element_type=jnp.float32)

    out_ref[0] = acc + bias_ref[...]


# ------------------------------ wrapper (glue) --------------------------------
def weight_quantizer_wrapper_forward(x, weight, bias, threshold, *,
                                     n_bits=N_BITS, stride=STRIDE, pad=PAD):
    """Forward of WeightQuantizerWrapper: conv2d(x, fake_quant(weight)) + bias.

    x:        [N, C, H, W]   f32 (NCHW)
    weight:   [O, C, kh, kw] f32 (OIHW float weight held by the wrapper)
    bias:     [O]            f32
    threshold:[O]            f32 per-output-channel quantization threshold
    returns:  [N, O, OH, OW] f32 (NCHW)
    """
    assert stride == 1, "flat-shift conv fusion assumes stride 1"
    n, c, h, w = x.shape
    o, c_w, kh, kw = weight.shape
    assert c_w == c

    hp, wpad = h + 2 * pad, w + 2 * pad
    oh, ow = hp - kh + 1, wpad - kw + 1
    qf = oh * wpad                                      # lane-dense output width
    flat = hp * wpad + (kw - 1)                         # +tail so last shift is in-bounds

    # Per-channel quant params (tiny, fused by XLA). thr is a power of two in
    # GPTQ, so multiply-by-reciprocal is bit-exact vs. the reference divide.
    # NOTE: thr == 0 guard makes w_q = 0 instead of the reference's NaN.
    thr = threshold.astype(jnp.float32)
    inv_delta = jnp.where(thr > 0.0, (2.0 ** (n_bits - 1)) / thr, 0.0).reshape(o, 1)
    delta = (thr * (1.0 / (2.0 ** (n_bits - 1)))).reshape(o, 1)
    bias2d = bias.reshape(o, 1).astype(jnp.float32)

    # Weight flattened tap-major (kh, kw, c) to match the in-kernel im2col order.
    w_flat = jnp.transpose(weight.astype(jnp.float32), (0, 2, 3, 1)).reshape(o, kh * kw * c)

    # Only XLA glue on x: pad spatially, flatten H*W, pad (kw-1) tail.
    xp = jnp.pad(x.astype(jnp.float32), ((0, 0), (0, 0), (pad, pad), (pad, pad)))
    x_flat = xp.reshape(n, c, hp * wpad)
    x_flat = jnp.pad(x_flat, ((0, 0), (0, 0), (0, flat - hp * wpad)))

    kernel = functools.partial(_fused_conv_fq_kernel, c=c, kh=kh, kw=kw,
                               wp=wpad, qf=qf, n_bits=n_bits)

    cost = pl.CostEstimate(
        flops=2 * n * qf * (kh * kw * c) * o,
        transcendentals=0,
        bytes_accessed=4 * (n * c * flat + o * kh * kw * c + 3 * o + n * o * qf),
    )

    out_flat = pl.pallas_call(
        kernel,
        out_shape=jax.ShapeDtypeStruct((n, o, qf), jnp.float32),
        grid=(n,),
        in_specs=[
            pl.BlockSpec((o, kh * kw * c), lambda b: (0, 0)),   # weight (resident)
            pl.BlockSpec((o, 1), lambda b: (0, 0)),             # inv_delta
            pl.BlockSpec((o, 1), lambda b: (0, 0)),             # delta
            pl.BlockSpec((o, 1), lambda b: (0, 0)),             # bias
            pl.BlockSpec((1, c, flat), lambda b: (b, 0, 0)),    # padded flat x
        ],
        out_specs=pl.BlockSpec((1, o, qf), lambda b: (b, 0, 0)),
        compiler_params=pltpu.CompilerParams(
            dimension_semantics=("parallel",)),  # v7x: one batch elem per TC
        cost_estimate=cost,
    )(w_flat, inv_delta, delta, bias2d, x_flat)

    # (N, O, OH*WP) -> (N, O, OH, WP) -> drop the (WP-OW) padded columns.
    # Pure contiguous reshape + a tiny slice; no transpose needed (already NCHW).
    out = out_flat.reshape(n, o, oh, wpad)[:, :, :, :ow]
    return out


# ------------------------------ reference -------------------------------------
def _reference_forward(x, weight, bias, threshold, n_bits=N_BITS):
    delta = (threshold / (2.0 ** (n_bits - 1))).reshape(-1, 1, 1, 1)
    qmin = -(2.0 ** (n_bits - 1))
    qmax = 2.0 ** (n_bits - 1) - 1.0
    w_q = jnp.clip(jnp.round(weight / delta), qmin, qmax) * delta
    y = lax.conv_general_dilated(
        x, w_q, window_strides=(STRIDE, STRIDE),
        padding=[(PAD, PAD), (PAD, PAD)],
        dimension_numbers=("NCHW", "OIHW", "NCHW"))
    return y + bias.reshape(1, -1, 1, 1)


# -------------------------------- main -----------------------------------------
if __name__ == "__main__":
    key = jax.random.PRNGKey(0)
    kx, kw_, kb = jax.random.split(key, 3)

    # Deterministic synthetic "node" parameters (no checkpoint load).
    x = jax.random.normal(kx, (2, IN_CH, 16, 16), dtype=jnp.float32)
    weight = jax.random.normal(kw_, (OUT_CH, IN_CH, KH, KW), dtype=jnp.float32) * 0.2
    bias = jax.random.normal(kb, (OUT_CH,), dtype=jnp.float32) * 0.1

    # Quantizer init: symmetric per-output-channel power-of-two threshold.
    max_abs = jnp.max(jnp.abs(weight.reshape(OUT_CH, -1)), axis=1)
    threshold = 2.0 ** jnp.ceil(jnp.log2(max_abs))

    fwd = jax.jit(weight_quantizer_wrapper_forward)
    y = fwd(x, weight, bias, threshold)
    y = jax.block_until_ready(y)

    y_ref = _reference_forward(x, weight, bias, threshold)
    assert y.shape == (2, OUT_CH, 16, 16)
    assert jnp.allclose(y, y_ref, atol=1e-4, rtol=1e-4), "mismatch vs reference"

    print("KERNEL_OK")
</pallas_src>

<mosaic_0001>
module attributes {stable_mosaic.version = 11 : i64} {
  func.func @_fused_conv_fq_kernel(%arg0: i32, %arg1: memref<8x36xf32, #tpu.memory_space<vmem>>, %arg2: memref<8x1xf32, #tpu.memory_space<vmem>>, %arg3: memref<8x1xf32, #tpu.memory_space<vmem>>, %arg4: memref<8x1xf32, #tpu.memory_space<vmem>>, %arg5: memref<1x4x326xf32, #tpu.memory_space<vmem>>, %arg6: memref<1x8x288xf32, #tpu.memory_space<vmem>>) attributes {dimension_semantics = [#tpu.dimension_semantics<parallel>], iteration_bounds = array<i64: 2>, scalar_prefetch = 0 : i64, scratch_operands = 0 : i64, tpu.core_type = #tpu.core_type<tc>, window_params = [{pipeline_mode = #tpu.pipeline_mode<synchronous>, transform_indices = @transform_0, window_bounds = array<i64: 8, 36>}, {pipeline_mode = #tpu.pipeline_mode<synchronous>, transform_indices = @transform_1, window_bounds = array<i64: 8, 1>}, {pipeline_mode = #tpu.pipeline_mode<synchronous>, transform_indices = @transform_2, window_bounds = array<i64: 8, 1>}, {pipeline_mode = #tpu.pipeline_mode<synchronous>, transform_indices = @transform_3, window_bounds = array<i64: 8, 1>}, {transform_indices = @transform_4, window_bounds = array<i64: 1, 4, 326>}, {transform_indices = @transform_5, window_bounds = array<i64: 1, 8, 288>}]} {
    %c0 = arith.constant 0 : index
    %c0_0 = arith.constant 0 : index
    %0 = vector.load %arg1[%c0, %c0_0] : memref<8x36xf32, #tpu.memory_space<vmem>>, vector<8x36xf32>
    %c0_1 = arith.constant 0 : index
    %c0_2 = arith.constant 0 : index
    %1 = vector.load %arg2[%c0_1, %c0_2] : memref<8x1xf32, #tpu.memory_space<vmem>>, vector<8x1xf32>
    %2 = vector.broadcast %1 : vector<8x1xf32> to vector<8x36xf32>
    %3 = arith.mulf %0, %2 : vector<8x36xf32>
    %4 = math.roundeven %3 : vector<8x36xf32>
    %cst = arith.constant -8.000000e+00 : f32
    %cst_3 = arith.constant 7.000000e+00 : f32
    %5 = vector.broadcast %cst : f32 to vector<8x36xf32>
    %6 = arith.maximumf %5, %4 : vector<8x36xf32>
    %7 = vector.broadcast %cst_3 : f32 to vector<8x36xf32>
    %8 = arith.minimumf %7, %6 : vector<8x36xf32>
    %c0_4 = arith.constant 0 : index
    %c0_5 = arith.constant 0 : index
    %9 = vector.load %arg3[%c0_4, %c0_5] : memref<8x1xf32, #tpu.memory_space<vmem>>, vector<8x1xf32>
    %10 = vector.broadcast %9 : vector<8x1xf32> to vector<8x36xf32>
    %11 = arith.mulf %8, %10 : vector<8x36xf32>
    %c0_6 = arith.constant 0 : index
    %c0_7 = arith.constant 0 : index
    %c0_8 = arith.constant 0 : index
    %12 = vector.load %arg5[%c0_6, %c0_7, %c0_8] : memref<1x4x326xf32, #tpu.memory_space<vmem>>, vector<1x4x326xf32>
    %13 = vector.shape_cast %12 : vector<1x4x326xf32> to vector<4x326xf32>
    %cst_9 = arith.constant 0.000000e+00 : f32
    %14 = vector.broadcast %cst_9 : f32 to vector<8x288xf32>
    %15 = vector.extract_strided_slice %13 {offsets = [0, 0], sizes = [4, 288], strides = [1, 1]} : vector<4x326xf32> to vector<4x288xf32>
    %16 = vector.extract_strided_slice %11 {offsets = [0, 0], sizes = [8, 4], strides = [1, 1]} : vector<8x36xf32> to vector<8x4xf32>
    %cst_10 = arith.constant dense<0.000000e+00> : vector<8x288xf32>
    %17 = tpu.matmul %16, %15, %cst_10 {dimension_numbers = #tpu.dot_dimension_numbers<[1], [0], [0], [1], [0, 0, 1, 1], [], []>} : vector<8x4xf32>, vector<4x288xf32>, vector<8x288xf32> -> vector<8x288xf32>
    %18 = arith.addf %14, %17 : vector<8x288xf32>
    %19 = vector.extract_strided_slice %13 {offsets = [0, 1], sizes = [4, 288], strides = [1, 1]} : vector<4x326xf32> to vector<4x288xf32>
    %20 = vector.extract_strided_slice %11 {offsets = [0, 4], sizes = [8, 4], strides = [1, 1]} : vector<8x36xf32> to vector<8x4xf32>
    %cst_11 = arith.constant dense<0.000000e+00> : vector<8x288xf32>
    %21 = tpu.matmul %20, %19, %cst_11 {dimension_numbers = #tpu.dot_dimension_numbers<[1], [0], [0], [1], [0, 0, 1, 1], [], []>} : vector<8x4xf32>, vector<4x288xf32>, vector<8x288xf32> -> vector<8x288xf32>
    %22 = arith.addf %18, %21 : vector<8x288xf32>
    %23 = vector.extract_strided_slice %13 {offsets = [0, 2], sizes = [4, 288], strides = [1, 1]} : vector<4x326xf32> to vector<4x288xf32>
    %24 = vector.extract_strided_slice %11 {offsets = [0, 8], sizes = [8, 4], strides = [1, 1]} : vector<8x36xf32> to vector<8x4xf32>
    %cst_12 = arith.constant dense<0.000000e+00> : vector<8x288xf32>
    %25 = tpu.matmul %24, %23, %cst_12 {dimension_numbers = #tpu.dot_dimension_numbers<[1], [0], [0], [1], [0, 0, 1, 1], [], []>} : vector<8x4xf32>, vector<4x288xf32>, vector<8x288xf32> -> vector<8x288xf32>
    %26 = arith.addf %22, %25 : vector<8x288xf32>
    %27 = vector.extract_strided_slice %13 {offsets = [0, 18], sizes = [4, 288], strides = [1, 1]} : vector<4x326xf32> to vector<4x288xf32>
    %28 = vector.extract_strided_slice %11 {offsets = [0, 12], sizes = [8, 4], strides = [1, 1]} : vector<8x36xf32> to vector<8x4xf32>
    %cst_13 = arith.constant dense<0.000000e+00> : vector<8x288xf32>
    %29 = tpu.matmul %28, %27, %cst_13 {dimension_numbers = #tpu.dot_dimension_numbers<[1], [0], [0], [1], [0, 0, 1, 1], [], []>} : vector<8x4xf32>, vector<4x288xf32>, vector<8x288xf32> -> vector<8x288xf32>
    %30 = arith.addf %26, %29 : vector<8x288xf32>
    %31 = vector.extract_strided_slice %13 {offsets = [0, 19], sizes = [4, 288], strides = [1, 1]} : vector<4x326xf32> to vector<4x288xf32>
    %32 = vector.extract_strided_slice %11 {offsets = [0, 16], sizes = [8, 4], strides = [1, 1]} : vector<8x36xf32> to vector<8x4xf32>
    %cst_14 = arith.constant dense<0.000000e+00> : vector<8x288xf32>
    %33 = tpu.matmul %32, %31, %cst_14 {dimension_numbers = #tpu.dot_dimension_numbers<[1], [0], [0], [1], [0, 0, 1, 1], [], []>} : vector<8x4xf32>, vector<4x288xf32>, vector<8x288xf32> -> vector<8x288xf32>
    %34 = arith.addf %30, %33 : vector<8x288xf32>
    %35 = vector.extract_strided_slice %13 {offsets = [0, 20], sizes = [4, 288], strides = [1, 1]} : vector<4x326xf32> to vector<4x288xf32>
    %36 = vector.extract_strided_slice %11 {offsets = [0, 20], sizes = [8, 4], strides = [1, 1]} : vector<8x36xf32> to vector<8x4xf32>
    %cst_15 = arith.constant dense<0.000000e+00> : vector<8x288xf32>
    %37 = tpu.matmul %36, %35, %cst_15 {dimension_numbers = #tpu.dot_dimension_numbers<[1], [0], [0], [1], [0, 0, 1, 1], [], []>} : vector<8x4xf32>, vector<4x288xf32>, vector<8x288xf32> -> vector<8x288xf32>
    %38 = arith.addf %34, %37 : vector<8x288xf32>
    %39 = vector.extract_strided_slice %13 {offsets = [0, 36], sizes = [4, 288], strides = [1, 1]} : vector<4x326xf32> to vector<4x288xf32>
    %40 = vector.extract_strided_slice %11 {offsets = [0, 24], sizes = [8, 4], strides = [1, 1]} : vector<8x36xf32> to vector<8x4xf32>
    %cst_16 = arith.constant dense<0.000000e+00> : vector<8x288xf32>
    %41 = tpu.matmul %40, %39, %cst_16 {dimension_numbers = #tpu.dot_dimension_numbers<[1], [0], [0], [1], [0, 0, 1, 1], [], []>} : vector<8x4xf32>, vector<4x288xf32>, vector<8x288xf32> -> vector<8x288xf32>
    %42 = arith.addf %38, %41 : vector<8x288xf32>
    %43 = vector.extract_strided_slice %13 {offsets = [0, 37], sizes = [4, 288], strides = [1, 1]} : vector<4x326xf32> to vector<4x288xf32>
    %44 = vector.extract_strided_slice %11 {offsets = [0, 28], sizes = [8, 4], strides = [1, 1]} : vector<8x36xf32> to vector<8x4xf32>
    %cst_17 = arith.constant dense<0.000000e+00> : vector<8x288xf32>
    %45 = tpu.matmul %44, %43, %cst_17 {dimension_numbers = #tpu.dot_dimension_numbers<[1], [0], [0], [1], [0, 0, 1, 1], [], []>} : vector<8x4xf32>, vector<4x288xf32>, vector<8x288xf32> -> vector<8x288xf32>
    %46 = arith.addf %42, %45 : vector<8x288xf32>
    %47 = vector.extract_strided_slice %13 {offsets = [0, 38], sizes = [4, 288], strides = [1, 1]} : vector<4x326xf32> to vector<4x288xf32>
    %48 = vector.extract_strided_slice %11 {offsets = [0, 32], sizes = [8, 4], strides = [1, 1]} : vector<8x36xf32> to vector<8x4xf32>
    %cst_18 = arith.constant dense<0.000000e+00> : vector<8x288xf32>
    %49 = tpu.matmul %48, %47, %cst_18 {dimension_numbers = #tpu.dot_dimension_numbers<[1], [0], [0], [1], [0, 0, 1, 1], [], []>} : vector<8x4xf32>, vector<4x288xf32>, vector<8x288xf32> -> vector<8x288xf32>
    %50 = arith.addf %46, %49 : vector<8x288xf32>
    %c0_19 = arith.constant 0 : index
    %c0_20 = arith.constant 0 : index
    %51 = vector.load %arg4[%c0_19, %c0_20] : memref<8x1xf32, #tpu.memory_space<vmem>>, vector<8x1xf32>
    %52 = vector.broadcast %51 : vector<8x1xf32> to vector<8x288xf32>
    %53 = arith.addf %50, %52 : vector<8x288xf32>
    %c0_21 = arith.constant 0 : index
    %c0_22 = arith.constant 0 : index
    %c0_23 = arith.constant 0 : index
    %54 = vector.load %arg6[%c0_21, %c0_22, %c0_23] : memref<1x8x288xf32, #tpu.memory_space<vmem>>, vector<1x8x288xf32>
    %55 = vector.shape_cast %54 : vector<1x8x288xf32> to vector<8x288xf32>
    %56 = vector.shape_cast %53 : vector<8x288xf32> to vector<1x8x288xf32>
    tpu.vector_store %arg6[%c0_21, %c0_22, %c0_23], %56 {strides = array<i32>} : memref<1x8x288xf32, #tpu.memory_space<vmem>>, vector<1x8x288xf32>,
    return
  }
  func.func @transform_0(%arg0: i32) -> (i32, i32) {
    %c0_i32 = arith.constant 0 : i32
    %c0_i32_0 = arith.constant 0 : i32
    %c0_i32_1 = arith.constant 0 : i32
    return %c0_i32, %c0_i32_0 : i32, i32
  }
  func.func @transform_1(%arg0: i32) -> (i32, i32) {
    %c0_i32 = arith.constant 0 : i32
    %c0_i32_0 = arith.constant 0 : i32
    %c0_i32_1 = arith.constant 0 : i32
    return %c0_i32, %c0_i32_0 : i32, i32
  }
  func.func @transform_2(%arg0: i32) -> (i32, i32) {
    %c0_i32 = arith.constant 0 : i32
    %c0_i32_0 = arith.constant 0 : i32
    %c0_i32_1 = arith.constant 0 : i32
    return %c0_i32, %c0_i32_0 : i32, i32
  }
  func.func @transform_3(%arg0: i32) -> (i32, i32) {
    %c0_i32 = arith.constant 0 : i32
    %c0_i32_0 = arith.constant 0 : i32
    %c0_i32_1 = arith.constant 0 : i32
    return %c0_i32, %c0_i32_0 : i32, i32
  }
  func.func @transform_4(%arg0: i32) -> (i32, i32, i32) {
    %c0_i32 = arith.constant 0 : i32
    %c0_i32_0 = arith.constant 0 : i32
    %c0_i32_1 = arith.constant 0 : i32
    return %arg0, %c0_i32, %c0_i32_0 : i32, i32, i32
  }
  func.func @transform_5(%arg0: i32) -> (i32, i32, i32) {
    %c0_i32 = arith.constant 0 : i32
    %c0_i32_0 = arith.constant 0 : i32
    %c0_i32_1 = arith.constant 0 : i32
    return %arg0, %c0_i32, %c0_i32_0 : i32, i32, i32
  }
}

</mosaic_0001>

<bundles_post_ra>
// kernel: weight_quantizer_wrapper_forward.1
= control target key start
LH: loop header
LB: loop body
LE: loop exit
PB: predicated region body
PF: predicated region fallthrough
CT: control target
= control target key end

     0   :  { %s1980_s18 = smov 0   ;;  %s2155_s0 = inlined_call_operand.vmem [shape: f32[8,36], index: 0, kind: input, shape index: {}]   ;;  %s2156_s1 = inlined_call_operand.vmem [shape: f32[8,1], index: 1, kind: input, shape index: {}]   ;;  %s2157_s2 = inlined_call_operand.vmem [shape: f32[8,1], index: 2, kind: input, shape index: {}]   ;;  %s2158_s3 = inlined_call_operand.vmem [shape: f32[8,1], index: 3, kind: input, shape index: {}]   ;;  %s2159_s4 = inlined_call_operand.vmem [shape: f32[2,4,326], index: 4, kind: input, shape index: {}]   ;;  %s2160_s5 = inlined_call_operand.vmem [shape: f32[2,8,288], index: 5, kind: output, shape index: {}]  }
   0x1 LB: > { %s1769_s19 = sadd.s32 4294967295, %s1930_s18   ;;  %p1773_p0 = scmp.ge.s32.totalorder %s1930_s18, 1  ;;  %s1930_s18 = sphi %s1980_s18, %s15_s18  }
   0x2   : > { %p187_p1 = scmp.lt.s32.totalorder %s1930_s18, 3 }
   0x4   : > { %p188_p2 = pnand %p1773_p0, %p187_p1 }
   0x5   : > { %p215_p3 = scmp.lt.s32.totalorder (!%p188_p2), %s1769_s19, 1  ;;  %s1933_s28 = smov (!%p188_p2), 127  }
   0x6   : > { %191 = sbr.rel (%p188_p2) target bundleno = 501 (0x1f5), region = 40  ;;  %s1934_s29 = smov (!%p188_p2), 126  }
   0x7   : > { %s1935_s30 = smov (!%p188_p2), 110   ;;  %s1936_s6 = smov (!%p188_p2), 109  }
   0x8   : > { %s1937_s7 = smov (!%p188_p2), 108   ;;  %s1938_s8 = smov (!%p188_p2), 92  }
   0x9   : > { %s1939_s9 = smov (!%p188_p2), 91   ;;  %s1940_s10 = smov (!%p188_p2), 90  }
   0xa   : > { %s1943_s15 = smov (!%p188_p2), 124   ;;  %s1944_s16 = smov (!%p188_p2), 120  }
   0xb   : > { %v226_v0 = vld [vmem:[%s2156_s1] sm:$0xff]  ;;  %v1932_v1 = vmov 0   ;;  %s2162_s19 = smov (!%p215_p3, %s1769_s19), 1  ;;  %v1941_v6 = vmov 0.0   ;;  %vm1942_vm0 = vmmov 0   ;;  %vm263_vm1 = vcmask 1043456  }
   0xc   : > { %1922 = vset.pattern.permute.xlu0 %v1932_v1  ;;  %v236_v2 = vld [vmem:[%s2157_s2] sm:$0xff]  ;;  %s1886_s24 = smul.u32 12, %s2162_s19  ;;  %1841 = vmatprep.subr.mxu1 %v1941_v6  ;;  %vm257_vm2 = vcmask 1039360   ;;  %s1945_s17 = smov 116   ;;  %vm260_vm4 = vcmask 31744   ;;  %vm568_vm5 = vcmask 1031168  }
   0xd   : > { %229 = vperm.xlu0 %1922, %v226_v0   ;;  %v1701_v7 = vld [vmem:[%s2158_s3] sm:$0xff]  ;;  %334 = vmatprep.mubr.f32.mxu0 %v1941_v6  ;;  %s1946_s20 = smov 112   ;;  %s1947_s21 = smov 104   ;;  %vm731_vm6 = vcmask 900096   ;;  %vm894_vm7 = vcmask 891904   ;;  %vm1057_vm8 = vcmask 883712  }
   0xe   : > { %s219_s27 = scalar_lea.vmem %s2159_s4, %s1886_s24  ;;  %1843 = vmatprep.mubr.msk.f32.mxu1 %vm1942_vm0, %v1941_v6  ;;  %v225_v9 = vld [vmem:[%s2155_s0] sm:$0xff]  ;;  %s1948_s22 = smov 100   ;;  %vm1220_vm9 = vcmask 752640   ;;  %vm1383_vm10 = vcmask 744448   ;;  %vm1546_vm11 = vcmask 736256   ;;  %vm1712_vm12 = vcmask 261120  }
   0xf   : > { %v2000_v3 = vld [vmem:[%s219_s27] sm:$0xff]  ;;  %v2002_v4 = vld [vmem:[%s219_s27 + $0x8] sm:$0xf]  ;;  %s1949_s23 = smov 96   ;;  %s1887_s24 = smul.u32 24, %s2162_s19 }
  0x10   : > { %255 = vrot.lane.b32.xlu1 %v2002_v4, %s1933_s28  ;;  %v250_v5 = vcombine.high %v2000_v3, %v2000_v3 }
  0x11   : > { %239 = vperm.xlu0 %1922, %v236_v2   ;;  %s224_s27 = scalar_lea.vmem %s2160_s5, %s1887_s24 }
  0x14   : > { %253 = vrot.lane.b32.xlu1 %v250_v5, %s1933_s28 }
  0x15   : > { %251 = vrot.lane.b32.xlu0 %v2000_v3, %s1933_s28 }
  0x18   : > { %566 = vrot.lane.b32.xlu1 %v2002_v4, %s1934_s29 }
  0x19   : > { %564 = vrot.lane.b32.xlu0 %v250_v5, %s1934_s29 }
  0x1c   : > { %729 = vrot.lane.b32.xlu1 %v2002_v4, %s1935_s30 }
  0x1d   : > { %562 = vrot.lane.b32.xlu0 %v2000_v3, %s1934_s29 }
  0x20   : > { %892 = vrot.lane.b32.xlu1 %v2002_v4, %s1936_s6 }
  0x21   : > { %727 = vrot.lane.b32.xlu0 %v250_v5, %s1935_s30 }
  0x24   : > { %1055 = vrot.lane.b32.xlu1 %v2002_v4, %s1937_s7 }
  0x25   : > { %725 = vrot.lane.b32.xlu0 %v2000_v3, %s1935_s30 }
  0x28   : > { %1218 = vrot.lane.b32.xlu1 %v2002_v4, %s1938_s8 }
  0x29   : > { %890 = vrot.lane.b32.xlu0 %v250_v5, %s1936_s6 }
  0x2c   : > { %1381 = vrot.lane.b32.xlu1 %v2002_v4, %s1939_s9 }
  0x2d   : > { %888 = vrot.lane.b32.xlu0 %v2000_v3, %s1936_s6 }
  0x31   : > { %1053 = vrot.lane.b32.xlu0 %v250_v5, %s1937_s7 }
  0x35   : > { %1051 = vrot.lane.b32.xlu0 %v2000_v3, %s1937_s7 }
  0x39   : > { %1216 = vrot.lane.b32.xlu0 %v250_v5, %s1938_s8 }
  0x3d   : > { %1214 = vrot.lane.b32.xlu0 %v2000_v3, %s1938_s8 }
  0x41   : > { %1379 = vrot.lane.b32.xlu0 %v250_v5, %s1939_s9 }
  0x45   : > { %1377 = vrot.lane.b32.xlu0 %v2000_v3, %s1939_s9 }
  0x49   : > { %1542 = vrot.lane.b32.xlu0 %v250_v5, %s1940_s10 }
  0x4d   : > { %1540 = vrot.lane.b32.xlu0 %v2000_v3, %s1940_s10 }
  0x51   : > { %1704 = vperm.xlu0 %1922, %v1701_v7  }
  0x82   : > { %v256_v8 = vpop.permute.xlu1 %255 }
  0x83   : > { %1842 = vmatpush3.msk.msra.mxu1 %vm263_vm1, %v256_v8 }
  0x84   : > { %1846 = vmatprep.subr.mxu1 %v1941_v6 }
  0x86   : > { %v254_v12 = vpop.permute.xlu1 %253 }
  0x87   : > { %v259_v13 = vsel %vm257_vm2, %v254_v12, %v256_v8 }
  0x88   : > { %v230_v10 = vpop.permute.xlu0 %229  ;;  %1776 = vmatprep.subr.msk.mxu0 %vm263_vm1, %v259_v13 }
  0x89   : > { %v232_v11 = vmul.f32 %v230_v10, %v225_v9 }
  0x8a   : > { %v567_v30 = vpop.permute.xlu1 %566 }
  0x8b   : > { %v1890_v14 = vcvt.f32.s32 %v232_v11  ;;  %v1888_v17 = vand.u32 2147483647, %v232_v11  ;;  %v1893_v19 = vand.u32 2147483648, %v232_v11 }
  0x8c   : > { %v240_v15 = vpop.permute.xlu0 %239 }
  0x8d   : > { %v1891_v16 = vcvt.s32.f32 %v1890_v14  ;;  %vm1889_vm3 = vcmp.lt.f32.partialorder %v1888_v17, 8388608.0 }
  0x8e   : > { %v730_v32 = vpop.permute.xlu1 %729 }
  0x8f   : > { %v1892_v18 = vand.u32 2147483647, %v1891_v16 }
  0x90   : > { %v252_v20 = vpop.permute.xlu0 %251 }
  0x91   : > { %v1894_v21 = vor.u32 %v1893_v19, %v1892_v18  ;;  %v258_v22 = vsel %vm257_vm2, %v252_v20, %v254_v12 }
  0x92   : > { %1777 = vmatpush1.msk.msra.mxu0 %vm263_vm1, %v258_v22  ;;  %v893_v34 = vpop.permute.xlu1 %892 }
  0x93   : > { %v1895_v23 = vsel %vm1889_vm3, %v1894_v21, %v232_v11  ;;  %1781 = vmatprep.subr.msk.mxu0 %vm263_vm1, %v250_v5 }
  0x94   : > { %v234_v24 = vmax.f32 %v1895_v23, -8.0  ;;  %v565_v27 = vpop.permute.xlu0 %564 }
  0x95   : > { %v570_v44 = vsel %vm568_vm5, %v565_v27, %v567_v30 }
  0x96   : > { %v235_v25 = vmin.f32 %v234_v24, 7.0  ;;  %v2044_v36 = vpop.permute.xlu1 %1055 }
  0x98   : > { %v242_v26 = vmul.f32 %v240_v15, %v235_v25  ;;  %v563_v28 = vpop.permute.xlu0 %562 }
  0x99   : > { %v569_v46 = vsel %vm568_vm5, %v563_v28, %v565_v27 }
  0x9a   : > { %246 = vrot.lane.b32.xlu1 %v242_v26, %s1943_s15  ;;  %v2046_v38 = vpop.permute.xlu1 %1218 }
  0x9c   : > { %v728_v29 = vpop.permute.xlu0 %727 }
  0x9d   : > { %v733_v47 = vsel %vm731_vm6, %v728_v29, %v730_v32 }
  0x9e   : > { %1544 = vrot.lane.b32.xlu1 %v2002_v4, %s1940_s10  ;;  %v2048_v40 = vpop.permute.xlu1 %1381 }
  0xa0   : > { %v726_v31 = vpop.permute.xlu0 %725 }
  0xa1   : > { %v732_v50 = vsel %vm731_vm6, %v726_v31, %v728_v29 }
  0xa2   : > { %560 = vrot.lane.b32.xlu1 %v242_v26, %s1944_s16 }
  0xa4   : > { %v891_v33 = vpop.permute.xlu0 %890 }
  0xa5   : > { %v896_v51 = vsel %vm894_vm7, %v891_v33, %v893_v34 }
  0xa6   : > { %723 = vrot.lane.b32.xlu1 %v242_v26, %s1945_s17 }
  0xa8   : > { %v889_v35 = vpop.permute.xlu0 %888 }
  0xa9   : > { %v895_v53 = vsel %vm894_vm7, %v889_v35, %v891_v33 }
  0xaa   : > { %886 = vrot.lane.b32.xlu1 %v242_v26, %s1946_s20 }
  0xac   : > { %v1054_v37 = vpop.permute.xlu0 %1053 }
  0xad   : > { %v1059_v55 = vsel %vm1057_vm8, %v1054_v37, %v2044_v36 }
  0xae   : > { %1049 = vrot.lane.b32.xlu1 %v242_v26, %s1937_s7 }
  0xb0   : > { %v1052_v39 = vpop.permute.xlu0 %1051 }
  0xb1   : > { %v1058_v57 = vsel %vm1057_vm8, %v1052_v39, %v1054_v37 }
  0xb2   : > { %1212 = vrot.lane.b32.xlu1 %v242_v26, %s1947_s21 }
  0xb4   : > { %v2050_v41 = vpop.permute.xlu0 %1216 }
  0xb5   : > { %v1222_v58 = vsel %vm1220_vm9, %v2050_v41, %v2046_v38 }
  0xb6   : > { %1375 = vrot.lane.b32.xlu1 %v242_v26, %s1948_s22 }
  0xb8   : > { %v1215_v43 = vpop.permute.xlu0 %1214 }
  0xb9   : > { %v1221_v61 = vsel %vm1220_vm9, %v1215_v43, %v2050_v41 }
  0xba   : > { %1538 = vrot.lane.b32.xlu1 %v242_v26, %s1949_s23 }
  0xbc   : > { %v1380_v48 = vpop.permute.xlu0 %1379 }
  0xbd   : > { %v1385_v62 = vsel %vm1383_vm10, %v1380_v48, %v2048_v40 }
  0xc0   : > { %v1378_v54 = vpop.permute.xlu0 %1377 }
  0xc1   : > { %v1384_v0 = vsel %vm1383_vm10, %v1378_v54, %v1380_v48 }
  0xc4   : > { %v1543_v59 = vpop.permute.xlu0 %1542 }
  0xc8   : > { %v1541_v1 = vpop.permute.xlu0 %1540 }
 0x10c   : > { %v247_v42 = vpop.permute.xlu1 %246 }
 0x10d   : > { %1778 = vmatmul.mubr.msk.f32.vlgmr.msra.gmra.mxu0 %vm260_vm4, %v247_v42  ;;  %1844 = vmatmul.mubr.msk.f32.vlgmr.msra.gmra.mxu1 %vm260_vm4, %v247_v42 }
 0x10e   : > { %1782 = vmatpush1.msk.msra.mxu0 %vm263_vm1, %v2000_v3  ;;  %1847 = vmatpush3.msk.msra.mxu1 %vm263_vm1, %v2002_v4  ;;  %v1547_v3 = vsel %vm1546_vm11, %v1541_v1, %v1543_v59 }
 0x10f   : > { %1786 = vmatprep.subr.msk.mxu0 %vm263_vm1, %v570_v44  ;;  %483 = vmatprep.mubr.f32.mxu0 %v1941_v6 }
 0x110   : > { %1848 = vmatprep.mubr.msk.f32.mxu1 %vm1942_vm0, %v1941_v6  ;;  %1851 = vmatprep.subr.mxu1 %v1941_v6  ;;  %v2063_v45 = vpop.permute.xlu1 %1544 }
 0x111   : > { %1783 = vmatmul.mubr.msk.f32.vlgmr.msra.gmra.mxu0 %vm260_vm4, %v242_v26  ;;  %1849 = vmatmul.mubr.msk.f32.vlgmr.msra.gmra.mxu1 %vm260_vm4, %v242_v26  ;;  %v1548_v2 = vsel %vm1546_vm11, %v1543_v59, %v2063_v45 }
 0x112   : > { %1787 = vmatpush1.msk.msra.mxu0 %vm263_vm1, %v569_v46  ;;  %1852 = vmatpush3.msk.msra.mxu1 %vm263_vm1, %v567_v30 }
 0x113   : > { %1791 = vmatprep.subr.msk.mxu0 %vm263_vm1, %v733_v47  ;;  %643 = vmatprep.mubr.f32.mxu0 %v1941_v6 }
 0x114   : > { %1853 = vmatprep.mubr.msk.f32.mxu1 %vm1942_vm0, %v1941_v6  ;;  %1856 = vmatprep.subr.mxu1 %v1941_v6  ;;  %v561_v49 = vpop.permute.xlu1 %560 }
 0x115   : > { %1788 = vmatmul.mubr.msk.f32.vlgmr.msra.gmra.mxu0 %vm260_vm4, %v561_v49  ;;  %1854 = vmatmul.mubr.msk.f32.vlgmr.msra.gmra.mxu1 %vm260_vm4, %v561_v49 }
 0x116   : > { %1792 = vmatpush1.msk.msra.mxu0 %vm263_vm1, %v732_v50  ;;  %1857 = vmatpush3.msk.msra.mxu1 %vm263_vm1, %v730_v32 }
 0x117   : > { %1796 = vmatprep.subr.msk.mxu0 %vm263_vm1, %v896_v51  ;;  %806 = vmatprep.mubr.f32.mxu0 %v1941_v6 }
 0x118   : > { %1858 = vmatprep.mubr.msk.f32.mxu1 %vm1942_vm0, %v1941_v6  ;;  %1861 = vmatprep.subr.mxu1 %v1941_v6  ;;  %v724_v52 = vpop.permute.xlu1 %723 }
 0x119   : > { %1793 = vmatmul.mubr.msk.f32.vlgmr.msra.gmra.mxu0 %vm260_vm4, %v724_v52  ;;  %1859 = vmatmul.mubr.msk.f32.vlgmr.msra.gmra.mxu1 %vm260_vm4, %v724_v52 }
 0x11a   : > { %1797 = vmatpush1.msk.msra.mxu0 %vm263_vm1, %v895_v53  ;;  %1862 = vmatpush3.msk.msra.mxu1 %vm263_vm1, %v893_v34 }
 0x11b   : > { %1801 = vmatprep.subr.msk.mxu0 %vm263_vm1, %v1059_v55  ;;  %969 = vmatprep.mubr.f32.mxu0 %v1941_v6 }
 0x11c   : > { %1863 = vmatprep.mubr.msk.f32.mxu1 %vm1942_vm0, %v1941_v6  ;;  %1866 = vmatprep.subr.mxu1 %v1941_v6  ;;  %v887_v56 = vpop.permute.xlu1 %886 }
 0x11d   : > { %1798 = vmatmul.mubr.msk.f32.vlgmr.msra.gmra.mxu0 %vm260_vm4, %v887_v56  ;;  %1864 = vmatmul.mubr.msk.f32.vlgmr.msra.gmra.mxu1 %vm260_vm4, %v887_v56 }
 0x11e   : > { %1802 = vmatpush1.msk.msra.mxu0 %vm263_vm1, %v1058_v57  ;;  %1867 = vmatpush3.msk.msra.mxu1 %vm263_vm1, %v2044_v36 }
 0x11f   : > { %1806 = vmatprep.subr.msk.mxu0 %vm263_vm1, %v1222_v58  ;;  %1132 = vmatprep.mubr.f32.mxu0 %v1941_v6 }
 0x120   : > { %1868 = vmatprep.mubr.msk.f32.mxu1 %vm1942_vm0, %v1941_v6  ;;  %1871 = vmatprep.subr.mxu1 %v1941_v6  ;;  %v1050_v60 = vpop.permute.xlu1 %1049 }
 0x121   : > { %1803 = vmatmul.mubr.msk.f32.vlgmr.msra.gmra.mxu0 %vm260_vm4, %v1050_v60  ;;  %1869 = vmatmul.mubr.msk.f32.vlgmr.msra.gmra.mxu1 %vm260_vm4, %v1050_v60  ;;  %v1705_v60 = vpop.permute.xlu0 %1704 }
 0x122   : > { %1807 = vmatpush1.msk.msra.mxu0 %vm263_vm1, %v1221_v61  ;;  %1872 = vmatpush3.msk.msra.mxu1 %vm263_vm1, %v2046_v38 }
 0x123   : > { %1811 = vmatprep.subr.msk.mxu0 %vm263_vm1, %v1385_v62  ;;  %1295 = vmatprep.mubr.f32.mxu0 %v1941_v6 }
 0x124   : > { %1873 = vmatprep.mubr.msk.f32.mxu1 %vm1942_vm0, %v1941_v6  ;;  %1876 = vmatprep.subr.mxu1 %v1941_v6  ;;  %v1213_v63 = vpop.permute.xlu1 %1212 }
 0x125   : > { %1808 = vmatmul.mubr.msk.f32.vlgmr.msra.gmra.mxu0 %vm260_vm4, %v1213_v63  ;;  %1874 = vmatmul.mubr.msk.f32.vlgmr.msra.gmra.mxu1 %vm260_vm4, %v1213_v63 }
 0x126   : > { %1812 = vmatpush1.msk.msra.mxu0 %vm263_vm1, %v1384_v0  ;;  %1877 = vmatpush3.msk.msra.mxu1 %vm263_vm1, %v2048_v40 }
 0x127   : > { %1816 = vmatprep.subr.msk.mxu0 %vm263_vm1, %v1548_v2  ;;  %1458 = vmatprep.mubr.f32.mxu0 %v1941_v6 }
 0x128   : > { %1878 = vmatprep.mubr.msk.f32.mxu1 %vm1942_vm0, %v1941_v6  ;;  %1881 = vmatprep.subr.mxu1 %v1941_v6  ;;  %v1376_v4 = vpop.permute.xlu1 %1375 }
 0x129   : > { %1813 = vmatmul.mubr.msk.f32.vlgmr.msra.gmra.mxu0 %vm260_vm4, %v1376_v4  ;;  %1879 = vmatmul.mubr.msk.f32.vlgmr.msra.gmra.mxu1 %vm260_vm4, %v1376_v4 }
 0x12a   : > { %1817 = vmatpush1.msk.msra.mxu0 %vm263_vm1, %v1547_v3  ;;  %1882 = vmatpush3.msk.msra.mxu1 %vm263_vm1, %v2063_v45 }
 0x12b   : > { %1621 = vmatprep.mubr.f32.mxu0 %v1941_v6  ;;  %1883 = vmatprep.mubr.msk.f32.mxu1 %vm1942_vm0, %v1941_v6 }
 0x12c   : > { %v1539_v5 = vpop.permute.xlu1 %1538 }
 0x12d   : > { %1818 = vmatmul.mubr.msk.f32.vlgmr.msra.gmra.mxu0 %vm260_vm4, %v1539_v5  ;;  %1884 = vmatmul.mubr.msk.f32.vlgmr.msra.gmra.mxu1 %vm260_vm4, %v1539_v5 }
 0x1cd   : > { %v336_v7 = vpop.f32.mrf.mxu0  ;;  %v407_v8 = vpop.f32.mrf.mxu1 }
 0x1cf   : > { %v338_v9 = vpop.f32.mrf.mxu0  ;;  %v1845_v10 = vpop.f32.mrf.mxu1 }
 0x1d1   : > { %v485_v11 = vpop.f32.mrf.mxu0  ;;  %v556_v12 = vpop.f32.mrf.mxu1 }
 0x1d2   : > { %v486_v26 = vadd.f32 %v485_v11, %v336_v7  ;;  %v557_v27 = vadd.f32 %v556_v12, %v407_v8 }
 0x1d3   : > { %v487_v13 = vpop.f32.mrf.mxu0  ;;  %v1850_v14 = vpop.f32.mrf.mxu1 }
 0x1d4   : > { %v488_v30 = vadd.f32 %v487_v13, %v338_v9 }
 0x1d5   : > { %v645_v15 = vpop.f32.mrf.mxu0  ;;  %v716_v16 = vpop.f32.mrf.mxu1 }
 0x1d6   : > { %v720_v31 = vadd.f32 %v645_v15, %v486_v26  ;;  %v722_v32 = vadd.f32 %v716_v16, %v557_v27 }
 0x1d7   : > { %v647_v17 = vpop.f32.mrf.mxu0  ;;  %v1855_v18 = vpop.f32.mrf.mxu1 }
 0x1d8   : > { %v721_v35 = vadd.f32 %v647_v17, %v488_v30 }
 0x1d9   : > { %v808_v19 = vpop.f32.mrf.mxu0  ;;  %v879_v20 = vpop.f32.mrf.mxu1 }
 0x1da   : > { %v883_v36 = vadd.f32 %v808_v19, %v720_v31  ;;  %v885_v37 = vadd.f32 %v879_v20, %v722_v32 }
 0x1db   : > { %v810_v6 = vpop.f32.mrf.mxu0  ;;  %v1860_v21 = vpop.f32.mrf.mxu1 }
 0x1dc   : > { %v884_v40 = vadd.f32 %v810_v6, %v721_v35 }
 0x1dd   : > { %v971_v22 = vpop.f32.mrf.mxu0  ;;  %v1042_v23 = vpop.f32.mrf.mxu1 }
 0x1de   : > { %v1046_v41 = vadd.f32 %v971_v22, %v883_v36  ;;  %v1048_v42 = vadd.f32 %v1042_v23, %v885_v37 }
 0x1df   : > { %v973_v24 = vpop.f32.mrf.mxu0  ;;  %v1865_v25 = vpop.f32.mrf.mxu1 }
 0x1e0   : > { %v1047_v45 = vadd.f32 %v973_v24, %v884_v40 }
 0x1e1   : > { %v1134_v28 = vpop.f32.mrf.mxu0  ;;  %v1205_v29 = vpop.f32.mrf.mxu1 }
 0x1e2   : > { %v1209_v46 = vadd.f32 %v1134_v28, %v1046_v41  ;;  %v1211_v47 = vadd.f32 %v1205_v29, %v1048_v42 }
 0x1e3   : > { %v1136_v33 = vpop.f32.mrf.mxu0  ;;  %v1870_v34 = vpop.f32.mrf.mxu1 }
 0x1e4   : > { %v1210_v50 = vadd.f32 %v1136_v33, %v1047_v45 }
 0x1e5   : > { %v1297_v38 = vpop.f32.mrf.mxu0  ;;  %v1368_v39 = vpop.f32.mrf.mxu1 }
 0x1e6   : > { %v1372_v51 = vadd.f32 %v1297_v38, %v1209_v46  ;;  %v1374_v52 = vadd.f32 %v1368_v39, %v1211_v47 }
 0x1e7   : > { %v1299_v43 = vpop.f32.mrf.mxu0  ;;  %v1875_v44 = vpop.f32.mrf.mxu1 }
 0x1e8   : > { %v1373_v55 = vadd.f32 %v1299_v43, %v1210_v50 }
 0x1e9   : > { %v1460_v48 = vpop.f32.mrf.mxu0  ;;  %v1531_v49 = vpop.f32.mrf.mxu1 }
 0x1ea   : > { %v1535_v56 = vadd.f32 %v1460_v48, %v1372_v51  ;;  %v1537_v57 = vadd.f32 %v1531_v49, %v1374_v52 }
 0x1eb   : > { %v1462_v53 = vpop.f32.mrf.mxu0  ;;  %v1880_v54 = vpop.f32.mrf.mxu1 }
 0x1ec   : > { %v1536_v61 = vadd.f32 %v1462_v53, %v1373_v55 }
 0x1ed   : > { %v1623_v58 = vpop.f32.mrf.mxu0  ;;  %v1694_v59 = vpop.f32.mrf.mxu1 }
 0x1ee   : > { %v1698_v62 = vadd.f32 %v1623_v58, %v1535_v56  ;;  %v1700_v63 = vadd.f32 %v1694_v59, %v1537_v57 }
 0x1ef   : > { %v1625_v0 = vpop.f32.mrf.mxu0  ;;  %v1885_v1 = vpop.f32.mrf.mxu1 }
 0x1f0   : > { %v1707_v2 = vadd.f32 %v1705_v60, %v1698_v62  ;;  %v1709_v3 = vadd.f32 %v1705_v60, %v1700_v63  ;;  %v1699_v4 = vadd.f32 %v1625_v0, %v1536_v61 }
 0x1f2   : > { %1710 = vst [vmem:[%s224_s27] sm:$0xff] %v1707_v2  ;;  %1713 = vst.msk [vmem:[%s224_s27 + $0x10] sm:$0xff] %vm1712_vm12, %v1709_v3  ;;  %v1708_v5 = vadd.f32 %v1705_v60, %v1699_v4 }
 0x1f4   : > { %1711 = vst [vmem:[%s224_s27 + $0x8] sm:$0xff] %v1708_v5 }
 0x1f5 PF: > { %s15_s18 = sadd.s32 1, %s1930_s18  }
 0x1f6   : > { %p12_p4 = scmp.ge.s32.totalorder %s15_s18, 4  }
 0x1f8   :  { %14 = sbr.rel (!%p12_p4) target bundleno = 1 (0x1), region = 70 }

</bundles_post_ra>
